<compile_context>
chip_gen: v5e
topology: v5e:2x2
jax: 0.10.0
libtpu: 0.0.40
codegen_flags: <defaults>
</compile_context>

<pallas_src>
import functools
import math

import jax
import jax.numpy as jnp
from jax.experimental import pallas as pl
from jax.experimental.pallas import tpu as pltpu

_LANE = 128      # lane width  (last-dim tiling unit)
_SUBLANE = 8     # sublane width (second-minor tiling unit, f32)


# ------------------------------ helpers -------------------------------------

def _round_up(n, m):
    return (n + m - 1) // m * m


def _pick_tile(total, cap):
    """Largest multiple of 128 that divides `total` and is <= max(cap, 128)."""
    t = min(total, max(cap, _LANE))
    t = (t // _LANE) * _LANE
    while total % t:
        t -= _LANE
    return t


def _pad2d(a, rows, cols):
    r, c = a.shape
    return jnp.pad(a, ((0, rows - r), (0, cols - c)))


def _vmem_limit(est_bytes):
    # Footprint-derived scoped-VMEM limit, clamped so it is valid on every chip
    # generation (v7x physical VMEM is 64 MiB; defaults are 16/32 MiB scoped).
    return int(min(max(2 * est_bytes, 32 << 20), 64 << 20))


# ------------------------------ kernels --------------------------------------

def _net_eot_kernel_shallow(x_ref, w1_ref, b1_ref, w2r_ref, o_ref):
    # x:[TB,dim], w1:[dim,Kp], b1:[1,Kp], w2r:[1,Kp] (fc2 weight as a row), o:[TB,1]
    h = jnp.dot(x_ref[...], w1_ref[...],
                preferred_element_type=jnp.float32) + b1_ref[...]
    h = jnp.maximum(h, 0.0)                                   # ReLU (VPU)
    # fc2 (K -> 1): VPU multiply + XLU lane reduction (avoids an N=1 MXU matmul).
    y = jnp.sum(h * w2r_ref[...], axis=-1, keepdims=True)
    o_ref[...] = y.astype(o_ref.dtype)                        # fc2 bias added in wrapper


def _net_eot_kernel_deep(x_ref, w1_ref, b1_ref, w2_ref, b2_ref, w3r_ref,
                         o_ref, acc_ref):
    # grid = (batch tiles, hidden/contraction tiles); k axis is "arbitrary".
    # x:[TB,dim], w1 chunk:[dim,TH], b1 chunk:[1,TH], w2 chunk:[TH,Hp],
    # b2:[1,Hp], w3r:[1,Hp], o:[TB,1], acc:[TB,Hp] f32 scratch.
    k = pl.program_id(1)

    @pl.when(k == 0)
    def _init():
        acc_ref[...] = jnp.zeros_like(acc_ref)

    # fc1 chunk: [TB,dim] @ [dim,TH]  (bias + ReLU stay in f32)
    h1 = jnp.dot(x_ref[...], w1_ref[...],
                 preferred_element_type=jnp.float32) + b1_ref[...]
    h1 = jnp.maximum(h1, 0.0)

    # fc2 partial contraction, accumulated in f32.  If w2 was prepared as bf16
    # the activations are cast to bf16 for the MXU but accumulation stays f32.
    w2 = w2_ref[...]
    acc_ref[...] += jnp.dot(h1.astype(w2.dtype), w2,
                            preferred_element_type=jnp.float32)

    @pl.when(k == pl.num_programs(1) - 1)
    def _finalize():
        h2 = jnp.maximum(acc_ref[...] + b2_ref[...], 0.0)
        # fc3 (10K -> 1): VPU multiply + lane reduction instead of N=1 matmul.
        y = jnp.sum(h2 * w3r_ref[...], axis=-1, keepdims=True)
        o_ref[...] = y.astype(o_ref.dtype)                    # fc3 bias added in wrapper


# ------------------------------ wrapper ---------------------------------------

@functools.partial(jax.jit, static_argnames=("deeper", "batch_tile", "hidden_tile"))
def net_eot_forward(x, prepped, deeper=False, batch_tile=512, hidden_tile=512):
    """Net_EOT forward on params prepared by `prepare_params`."""
    B, dim = x.shape
    out_dtype = x.dtype

    # Batch tiling: pipeline x / out through VMEM, weights stay resident.
    TB = min(batch_tile, _round_up(B, _SUBLANE))
    Bp = _round_up(B, TB)
    xp = x if Bp == B else jnp.pad(x, ((0, Bp - B), (0, 0)))
    nb = Bp // TB

    if not deeper:
        w1, b1, w2_row, b2 = (prepped["w1"], prepped["b1"],
                              prepped["w2_row"], prepped["b2"])
        Kp = w1.shape[1]
        est = 4 * (2 * TB * dim + 2 * TB + dim * Kp + 2 * Kp)

        out = pl.pallas_call(
            _net_eot_kernel_shallow,
            out_shape=jax.ShapeDtypeStruct((Bp, 1), out_dtype),
            grid=(nb,),
            in_specs=[
                pl.BlockSpec((TB, dim), lambda i: (i, 0)),   # x tile (pipelined)
                pl.BlockSpec((dim, Kp), lambda i: (0, 0)),   # w1 (VMEM-resident)
                pl.BlockSpec((1, Kp), lambda i: (0, 0)),     # b1 (resident)
                pl.BlockSpec((1, Kp), lambda i: (0, 0)),     # fc2 weight row (resident)
            ],
            out_specs=pl.BlockSpec((TB, 1), lambda i: (i, 0)),
            compiler_params=pltpu.CompilerParams(
                dimension_semantics=("parallel",),
                vmem_limit_bytes=_vmem_limit(est)),
        )(xp, w1, b1, w2_row)
        return out[:B] + b2                                   # scalar fc2 bias

    w1, b1, w2, b2, w3_row, b3 = (prepped["w1"], prepped["b1"], prepped["w2"],
                                  prepped["b2"], prepped["w3_row"], prepped["b3"])
    Hp = w2.shape[1]                                          # padded 10*K
    TH = _pick_tile(Hp, hidden_tile)                          # k-tile of hidden dim
    nk = Hp // TH

    est = (4 * (2 * TB * dim + 2 * TB + TB * Hp + 2 * dim * TH + 2 * TH + 2 * Hp)
           + 2 * TH * Hp * w2.dtype.itemsize)                 # streamed w2 chunks

    out = pl.pallas_call(
        _net_eot_kernel_deep,
        out_shape=jax.ShapeDtypeStruct((Bp, 1), out_dtype),
        grid=(nb, nk),
        in_specs=[
            pl.BlockSpec((TB, dim), lambda i, k: (i, 0)),     # x (resident across k)
            pl.BlockSpec((dim, TH), lambda i, k: (0, k)),     # w1 column chunk
            pl.BlockSpec((1, TH), lambda i, k: (0, k)),       # b1 chunk
            pl.BlockSpec((TH, Hp), lambda i, k: (k, 0)),      # w2 row chunk (streamed)
            pl.BlockSpec((1, Hp), lambda i, k: (0, 0)),       # b2 (resident)
            pl.BlockSpec((1, Hp), lambda i, k: (0, 0)),       # fc3 weight row (resident)
        ],
        out_specs=pl.BlockSpec((TB, 1), lambda i, k: (i, 0)),
        scratch_shapes=[pltpu.VMEM((TB, Hp), jnp.float32)],   # fc2 accumulator
        compiler_params=pltpu.CompilerParams(
            dimension_semantics=("parallel", "arbitrary"),
            vmem_limit_bytes=_vmem_limit(est)),
    )(xp, w1, b1, w2, b2, w3_row)
    return out[:B] + b3                                       # scalar fc3 bias


# --------------------------- parameter handling --------------------------------

def init_net_eot_params(key, dim, K, deeper=False, dtype=jnp.float32):
    """torch.nn.Linear-style init (U[-1/sqrt(fan_in), 1/sqrt(fan_in)]);
    weights stored as [in_features, out_features]."""
    def linear(k, fan_in, fan_out):
        kw, kb = jax.random.split(k)
        bound = 1.0 / math.sqrt(fan_in)
        w = jax.random.uniform(kw, (fan_in, fan_out), dtype, -bound, bound)
        b = jax.random.uniform(kb, (1, fan_out), dtype, -bound, bound)
        return w, b

    if deeper:
        k1, k2, k3 = jax.random.split(key, 3)
        w1, b1 = linear(k1, dim, 10 * K)
        w2, b2 = linear(k2, 10 * K, 10 * K)
        w3, b3 = linear(k3, 10 * K, 1)
        return {"w1": w1, "b1": b1, "w2": w2, "b2": b2, "w3": w3, "b3": b3}
    k1, k2 = jax.random.split(key)
    w1, b1 = linear(k1, dim, K)
    w2, b2 = linear(k2, K, 1)
    return {"w1": w1, "b1": b1, "w2": w2, "b2": b2}


def prepare_params(params, deeper=False, matmul_dtype=None):
    """Zero-pad hidden feature dims to multiples of 128 (lane width), turn the
    final N=1 projection into a row vector, optionally cast the dominant fc2
    weight to `matmul_dtype` (e.g. bf16) — accumulation stays f32 in-kernel."""
    if deeper:
        dim, H = params["w1"].shape
        Hp = _round_up(H, _LANE)
        w2 = _pad2d(params["w2"], Hp, Hp)
        if matmul_dtype is not None:
            w2 = w2.astype(matmul_dtype)
        return {"w1": _pad2d(params["w1"], dim, Hp),
                "b1": _pad2d(params["b1"], 1, Hp),
                "w2": w2,
                "b2": _pad2d(params["b2"], 1, Hp),
                "w3_row": _pad2d(params["w3"].T, 1, Hp),
                "b3": params["b3"]}
    dim, K = params["w1"].shape
    Kp = _round_up(K, _LANE)
    return {"w1": _pad2d(params["w1"], dim, Kp),
            "b1": _pad2d(params["b1"], 1, Kp),
            "w2_row": _pad2d(params["w2"].T, 1, Kp),
            "b2": params["b2"]}


def net_eot_reference(x, params, deeper=False):
    h = jnp.maximum(x @ params["w1"] + params["b1"], 0.0)
    if deeper:
        h = jnp.maximum(h @ params["w2"] + params["b2"], 0.0)
        return h @ params["w3"] + params["b3"]
    return h @ params["w2"] + params["b2"]


# ------------------------------- main -----------------------------------------

if __name__ == "__main__":
    key = jax.random.PRNGKey(0)
    kx, kp, kpd = jax.random.split(key, 3)

    batch, dim, K = 8, 16, 32
    x = jax.random.normal(kx, (batch, dim), jnp.float32)

    # shallow (deeper=False) — the default path of Net_EOT
    params = init_net_eot_params(kp, dim, K, deeper=False)
    out = jax.block_until_ready(
        net_eot_forward(x, prepare_params(params, deeper=False), deeper=False))
    ref = net_eot_reference(x, params, deeper=False)
    assert out.shape == (batch, 1)
    assert jnp.allclose(out, ref, atol=1e-4, rtol=1e-4)

    # deeper=True path (f32); hidden_tile=128 so the k-tiled accumulator
    # (pl.when init/finalize over 3 chunks of the 320-wide hidden dim) is exercised.
    params_d = init_net_eot_params(kpd, dim, K, deeper=True)
    prepped_d = prepare_params(params_d, deeper=True)
    out_d = jax.block_until_ready(
        net_eot_forward(x, prepped_d, deeper=True, hidden_tile=128))
    ref_d = net_eot_reference(x, params_d, deeper=True)
    assert out_d.shape == (batch, 1)
    assert jnp.allclose(out_d, ref_d, atol=1e-4, rtol=1e-4)

    # deeper=True with bf16 fc2 weights / f32 accumulation (v6e/v7x MXU fast path).
    prepped_bf16 = prepare_params(params_d, deeper=True, matmul_dtype=jnp.bfloat16)
    out_bf16 = jax.block_until_ready(
        net_eot_forward(x, prepped_bf16, deeper=True, hidden_tile=128))
    assert out_bf16.shape == (batch, 1)
    assert bool(jnp.all(jnp.isfinite(out_bf16)))

    print("KERNEL_OK")
</pallas_src>

<mosaic_0001>
module attributes {stable_mosaic.version = 11 : i64} {
  func.func @_net_eot_kernel_shallow(%arg0: i32, %arg1: memref<8x16xf32, #tpu.memory_space<vmem>>, %arg2: memref<16x128xf32, #tpu.memory_space<vmem>>, %arg3: memref<1x128xf32, #tpu.memory_space<vmem>>, %arg4: memref<1x128xf32, #tpu.memory_space<vmem>>, %arg5: memref<8x1xf32, #tpu.memory_space<vmem>>) attributes {dimension_semantics = [#tpu.dimension_semantics<parallel>], iteration_bounds = array<i64: 1>, scalar_prefetch = 0 : i64, scratch_operands = 0 : i64, tpu.core_type = #tpu.core_type<tc>, window_params = [{transform_indices = @transform_0, window_bounds = array<i64: 8, 16>}, {pipeline_mode = #tpu.pipeline_mode<synchronous>, transform_indices = @transform_1, window_bounds = array<i64: 16, 128>}, {pipeline_mode = #tpu.pipeline_mode<synchronous>, transform_indices = @transform_2, window_bounds = array<i64: 1, 128>}, {pipeline_mode = #tpu.pipeline_mode<synchronous>, transform_indices = @transform_3, window_bounds = array<i64: 1, 128>}, {transform_indices = @transform_4, window_bounds = array<i64: 8, 1>}]} {
    %c0 = arith.constant 0 : index
    %c0_0 = arith.constant 0 : index
    %0 = vector.load %arg1[%c0, %c0_0] : memref<8x16xf32, #tpu.memory_space<vmem>>, vector<8x16xf32>
    %c0_1 = arith.constant 0 : index
    %c0_2 = arith.constant 0 : index
    %1 = vector.load %arg2[%c0_1, %c0_2] : memref<16x128xf32, #tpu.memory_space<vmem>>, vector<16x128xf32>
    %cst = arith.constant dense<0.000000e+00> : vector<8x128xf32>
    %2 = tpu.matmul %0, %1, %cst {dimension_numbers = #tpu.dot_dimension_numbers<[1], [0], [0], [1], [0, 0, 1, 1], [], []>} : vector<8x16xf32>, vector<16x128xf32>, vector<8x128xf32> -> vector<8x128xf32>
    %c0_3 = arith.constant 0 : index
    %c0_4 = arith.constant 0 : index
    %3 = vector.load %arg3[%c0_3, %c0_4] : memref<1x128xf32, #tpu.memory_space<vmem>>, vector<1x128xf32>
    %4 = vector.broadcast %3 : vector<1x128xf32> to vector<8x128xf32>
    %5 = arith.addf %2, %4 : vector<8x128xf32>
    %cst_5 = arith.constant 0.000000e+00 : f32
    %6 = vector.broadcast %cst_5 : f32 to vector<8x128xf32>
    %7 = arith.maximumf %5, %6 : vector<8x128xf32>
    %c0_6 = arith.constant 0 : index
    %c0_7 = arith.constant 0 : index
    %8 = vector.load %arg4[%c0_6, %c0_7] : memref<1x128xf32, #tpu.memory_space<vmem>>, vector<1x128xf32>
    %9 = vector.broadcast %8 : vector<1x128xf32> to vector<8x128xf32>
    %10 = arith.mulf %7, %9 : vector<8x128xf32>
    %cst_8 = arith.constant dense<0.000000e+00> : vector<8xf32>
    %11 = vector.multi_reduction <add>, %10, %cst_8 [1] : vector<8x128xf32> to vector<8xf32>
    %12 = vector.shape_cast %11 : vector<8xf32> to vector<8x1xf32>
    %c0_9 = arith.constant 0 : index
    %c0_10 = arith.constant 0 : index
    %13 = vector.load %arg5[%c0_9, %c0_10] : memref<8x1xf32, #tpu.memory_space<vmem>>, vector<8x1xf32>
    tpu.vector_store %arg5[%c0_9, %c0_10], %12 {strides = array<i32>} : memref<8x1xf32, #tpu.memory_space<vmem>>, vector<8x1xf32>,
    return
  }
  func.func @transform_0(%arg0: i32) -> (i32, i32) {
    %c0_i32 = arith.constant 0 : i32
    %c0_i32_0 = arith.constant 0 : i32
    return %arg0, %c0_i32 : i32, i32
  }
  func.func @transform_1(%arg0: i32) -> (i32, i32) {
    %c0_i32 = arith.constant 0 : i32
    %c0_i32_0 = arith.constant 0 : i32
    %c0_i32_1 = arith.constant 0 : i32
    return %c0_i32, %c0_i32_0 : i32, i32
  }
  func.func @transform_2(%arg0: i32) -> (i32, i32) {
    %c0_i32 = arith.constant 0 : i32
    %c0_i32_0 = arith.constant 0 : i32
    %c0_i32_1 = arith.constant 0 : i32
    return %c0_i32, %c0_i32_0 : i32, i32
  }
  func.func @transform_3(%arg0: i32) -> (i32, i32) {
    %c0_i32 = arith.constant 0 : i32
    %c0_i32_0 = arith.constant 0 : i32
    %c0_i32_1 = arith.constant 0 : i32
    return %c0_i32, %c0_i32_0 : i32, i32
  }
  func.func @transform_4(%arg0: i32) -> (i32, i32) {
    %c0_i32 = arith.constant 0 : i32
    %c0_i32_0 = arith.constant 0 : i32
    return %arg0, %c0_i32 : i32, i32
  }
}

</mosaic_0001>

<bundles_post_ra>
// kernel: net_eot_forward.1
= control target key start
LH: loop header
LB: loop body
LE: loop exit
PB: predicated region body
PF: predicated region fallthrough
CT: control target
= control target key end

     0   :  { %9 = vsyncpa [#allocation3], 0  ;;  %s197_s0 = inlined_call_operand.hbm [shape: f32[8,16], index: 0, kind: input, shape index: {}]   ;;  %s198_s1 = inlined_call_operand.hbm [shape: f32[16,128], index: 1, kind: input, shape index: {}]   ;;  %s199_s2 = inlined_call_operand.vmem [shape: f32[1,128], index: 2, kind: input, shape index: {}]   ;;  %s200_s3 = inlined_call_operand.vmem [shape: f32[1,128], index: 3, kind: input, shape index: {}]   ;;  %s201_s4 = inlined_call_operand.vmem [shape: f32[8,1], index: 4, kind: output, shape index: {}]  }
   0x1   :  { %s16_s17 = sshll.u32 %s197_s0, 4  ;;  %s17_s17 = int_to_ptr.hbm [resolvable:$true] %s16_s17 }
   0x2   :  { %10 = vsyncpa [#allocation5], 0  ;;  %s153_s18 = smov [#allocation2]   ;;  %s26_s22 = sshll.u32 %s198_s1, 4  ;;  %s27_s22 = int_to_ptr.hbm [resolvable:$true] %s26_s22 }
   0x3   :  { %s18_s19 = sshll.u32 %s153_s18, 4  ;;  %s154_s23 = smov [#allocation4]   ;;  %s19_s19 = int_to_ptr.vmem [resolvable:$true] %s18_s19 }
   0x4   :  { %21 = dma.hbm_to_vmem [thread:$0]  %s17_s17, 128, %s19_s19, [#allocation3]  }
   0x5   :  { %s28_s24 = sshll.u32 %s154_s23, 4  ;;  %s155_s25 = smov 128   ;;  %s29_s24 = int_to_ptr.vmem [resolvable:$true] %s28_s24 }
   0x6   :  { %s156_s26 = smov 8  }
   0x7   :  { %34 = dma.hbm_to_vmem [thread:$0]  %s27_s22, 256, %s29_s24, [#allocation5], %s155_s25, %s155_s25, %s156_s26  }
   0x8   :  { %149 = dma.done.wait [#allocation3], 128  }
   0x9   :  { %150 = vsyncadd [#allocation3], 4294967168 }
   0xa   :  { %151 = dma.done.wait [#allocation5], 256  }
   0xb   :  { %152 = vsyncadd [#allocation5], 4294967040  ;;  %v49_v0 = vld [vmem:[#allocation4 + $0x8] sm:$0xff]  ;;  %v48_v1 = vld [vmem:[#allocation4] sm:$0xff]  ;;  %vm54_vm0 = vcmask 130048   ;;  %vm86_vm1 = vcmask 7168  }
   0xc   :  { %72 = vmatpush.msra.mxu0 %v49_v0  ;;  %v47_v2 = vld [vmem:[#allocation2] sm:$0xff] }
   0xd   :  { %v99_v3 = vld [vmem:[%s199_s2] ss:$0 sm:$0xff] }
   0xe   :  { %73 = vmatpush.msra.mxu0 %v48_v1  ;;  %v100_v6 = vld [vmem:[%s200_s3] ss:$0 sm:$0xff] }
   0xf   :  { %94 = vmatmul.msk.f32.vlgmr.msra.gmra.mxu0 %vm54_vm0, %v47_v2 }
  0x8c   :  { %v75_v4 = vpop.f32.mrf.mxu0 }
  0x8d   :  { %v76_v5 = vadd.f32 %v99_v3, %v75_v4 }
  0x8f   :  { %v78_v7 = vmax.f32 %v76_v5, 0.0 }
  0x91   :  { %v83_v8 = vmul.f32 %v100_v6, %v78_v7 }
  0x93   :  { %84 = vadd.xlane.f32.xlu0 %v83_v8 }
 0x106   :  { %v85_v9 = vpop.xlane.xlu0 %84 }
 0x107   :  { %87 = vst.msk [vmem:[%s201_s4] sm:$0xff] %vm86_vm1, %v85_v9 }
 0x108   :  { %92 = vsyncpa [#allocation3], 1 }
 0x109   :  { %93 = vsyncpa [#allocation5], 1 }

</bundles_post_ra>
